<compile_context>
chip_gen: v5e
topology: v5e:2x2
jax: 0.10.0
libtpu: 0.0.40
codegen_flags: <defaults>
</compile_context>

<pallas_src>
import functools

import jax
import jax.numpy as jnp
from jax.experimental import pallas as pl
from jax.experimental.pallas import tpu as pltpu

BN_EPS = 1e-5
LANE = 128
SUBLANE = 16  # bf16 min sublane tile (also covers f32's 8)


def _round_up(n, m):
    return ((n + m - 1) // m) * m


def _deep_net_kernel(x_ref, w_ref, g_ref, b_ref, o_ref, act_ref, *, true_b):
    """One grid step == one [Linear -> BatchNorm1d(train) -> ReLU] layer.

    x_ref:   (Bp, D)  f32   padded input, resident (only read at layer 0)
    w_ref:   (D, D)   bf16  this layer's padded weight, pipelined per step
    g_ref:   (1, D)   f32   BN gamma (0 on padded lanes)
    b_ref:   (1, D)   f32   BN beta  (0 on padded lanes)
    o_ref:   (Bp, D)  f32   resident output, written on the last layer only
    act_ref: (Bp, D)  f32   VMEM scratch carrying the activation across layers
    """
    layer = pl.program_id(0)
    n_layers = pl.num_programs(0)

    @pl.when(layer == 0)
    def _():
        act_ref[...] = x_ref[...]

    act = act_ref[...]

    # Linear (bias omitted: training-mode BN's batch-mean subtraction cancels
    # it exactly).  bf16 MXU operands, f32 accumulation.
    y = jnp.dot(act.astype(jnp.bfloat16), w_ref[...],
                preferred_element_type=jnp.float32)

    # BatchNorm1d (training mode), single-pass stats over the TRUE batch.
    # Padded rows of `act` are kept exactly zero, so padded rows of `y` are
    # zero and contribute nothing to the sums; divide by the true batch size.
    inv_b = jnp.float32(1.0 / true_b)
    mean = jnp.sum(y, axis=0, keepdims=True) * inv_b
    ex2 = jnp.sum(y * y, axis=0, keepdims=True) * inv_b
    var = jnp.maximum(ex2 - mean * mean, 0.0)

    # Folded affine + ReLU:  out = relu(y*scale + shift)
    scale = g_ref[...] * jax.lax.rsqrt(var + BN_EPS)   # rsqrt -> EUP slot
    shift = b_ref[...] - mean * scale
    out = jnp.maximum(y * scale + shift, 0.0)

    if out.shape[0] != true_b:  # static: only emitted when batch was padded
        rows = jax.lax.broadcasted_iota(jnp.int32, out.shape, 0)
        out = jnp.where(rows < true_b, out, 0.0)

    @pl.when(layer < n_layers - 1)
    def _():
        act_ref[...] = out

    @pl.when(layer == n_layers - 1)
    def _():
        o_ref[...] = out.astype(o_ref.dtype)


@functools.partial(jax.jit, static_argnames=("out_dim",))
def _deep_net_call(x, w_stack, g_stack, b_stack, out_dim):
    B, din = x.shape
    L, d_pad, _ = w_stack.shape
    b_pad = _round_up(B, SUBLANE)

    # Lane/sublane-dense zero padding of the input activations.
    x_pad = jnp.zeros((b_pad, d_pad), jnp.float32).at[:B, :din].set(
        x.astype(jnp.float32))

    kernel = functools.partial(_deep_net_kernel, true_b=B)

    # VMEM budget: one double-buffered bf16 weight tile + resident x / out /
    # activation-carry + tiny gamma/beta slabs. Sized to stay well under v7x's
    # 64 MiB even at larger shapes; harmless default-ish value at toy shapes.
    act_bytes = b_pad * d_pad * 4
    need = (2 * d_pad * d_pad * 2        # weight (bf16, double-buffered)
            + 3 * act_bytes              # x + out + act scratch
            + 4 * 8 * d_pad * 4)         # gamma/beta (sublane-padded)
    vmem_limit = int(min(48 << 20, max(32 << 20, 2 * need)))

    cost = pl.CostEstimate(
        flops=2 * L * b_pad * d_pad * d_pad,
        transcendentals=L * d_pad,
        bytes_accessed=(w_stack.size * 2 + g_stack.size * 4 + b_stack.size * 4
                        + x_pad.size * 4 + b_pad * d_pad * 4),
    )

    out_pad = pl.pallas_call(
        kernel,
        out_shape=jax.ShapeDtypeStruct((b_pad, d_pad), jnp.float32),
        grid=(L,),
        in_specs=[
            pl.BlockSpec((b_pad, d_pad), lambda l: (0, 0)),          # x: resident
            pl.BlockSpec((None, d_pad, d_pad), lambda l: (l, 0, 0)),  # w[l]
            pl.BlockSpec((None, 1, d_pad), lambda l: (l, 0, 0)),      # gamma[l]
            pl.BlockSpec((None, 1, d_pad), lambda l: (l, 0, 0)),      # beta[l]
        ],
        out_specs=pl.BlockSpec((b_pad, d_pad), lambda l: (0, 0)),     # resident
        scratch_shapes=[pltpu.VMEM((b_pad, d_pad), jnp.float32)],
        compiler_params=pltpu.CompilerParams(
            dimension_semantics=("arbitrary",),
            vmem_limit_bytes=vmem_limit,
        ),
        cost_estimate=cost,
    )(x_pad, w_stack, g_stack, b_stack)

    return out_pad[:B, :out_dim]


def init_deep_net_params(key, input_shape, deep_layers):
    """Parameter init matching the nn.Module layer shapes.

    Linear(in, out): weight (in, out) [transposed vs. torch], bias (1, out)
    BatchNorm1d(out): gamma (1, out) = 1, beta (1, out) = 0
    (The bias is kept here for module fidelity but is not fed to the kernel:
     training-mode BatchNorm cancels it exactly.)
    """
    params = []
    dims = [input_shape] + list(deep_layers)
    for i in range(len(deep_layers)):
        din, dout = dims[i], dims[i + 1]
        key, kw, kb = jax.random.split(key, 3)
        bound = 1.0 / float(din) ** 0.5  # torch Linear default range
        w = jax.random.uniform(kw, (din, dout), jnp.float32, -bound, bound)
        b = jax.random.uniform(kb, (1, dout), jnp.float32, -bound, bound)
        gamma = jnp.ones((1, dout), jnp.float32)
        beta = jnp.zeros((1, dout), jnp.float32)
        params.append((w, b, gamma, beta))
    return params


def pack_deep_net_params(params, input_dim):
    """Pad feature dims to a lane-dense common size, cast weights to bf16."""
    dims = [input_dim] + [w.shape[1] for (w, _, _, _) in params]
    # TODO(synk): per-layer (din, dout) padding via a flat buffer + scalar-
    # prefetched offsets would avoid the global-max square pad at real sizes.
    d_pad = max(_round_up(d, LANE) for d in dims)
    L = len(params)
    w_stack = jnp.zeros((L, d_pad, d_pad), jnp.bfloat16)
    g_stack = jnp.zeros((L, 1, d_pad), jnp.float32)  # gamma=0 on padded lanes
    b_stack = jnp.zeros((L, 1, d_pad), jnp.float32)
    for l, (w, _b, gamma, beta) in enumerate(params):
        din, dout = w.shape
        w_stack = w_stack.at[l, :din, :dout].set(w.astype(jnp.bfloat16))
        g_stack = g_stack.at[l, :, :dout].set(gamma)
        b_stack = b_stack.at[l, :, :dout].set(beta)
    return w_stack, g_stack, b_stack, dims[-1]


def make_deep_net_forward(params, input_dim):
    """Pack/pad the parameters ONCE; return a jitted forward closure."""
    w_stack, g_stack, b_stack, out_dim = pack_deep_net_params(params, input_dim)

    def forward(x):
        return _deep_net_call(x, w_stack, g_stack, b_stack, out_dim)

    return forward


def _reference_forward(x, params):
    """Pure-JAX f32 reference (with bias, unpadded) for correctness checking."""
    out = x
    for (w, b, gamma, beta) in params:
        y = out @ w + b
        mean = jnp.mean(y, axis=0, keepdims=True)
        var = jnp.mean((y - mean) ** 2, axis=0, keepdims=True)
        y_hat = (y - mean) / jnp.sqrt(var + BN_EPS)
        out = jnp.maximum(y_hat * gamma + beta, 0.0)
    return out


if __name__ == "__main__":
    key = jax.random.PRNGKey(0)
    kx, kp = jax.random.split(key)

    batch = 8
    input_shape = 32
    deep_layers = [64, 32]

    x = jax.random.normal(kx, (batch, input_shape), jnp.float32)
    params = init_deep_net_params(kp, input_shape, deep_layers)

    forward = make_deep_net_forward(params, input_shape)
    out = jax.block_until_ready(forward(x))

    ref = _reference_forward(x, params)
    assert out.shape == (batch, deep_layers[-1])
    # Tolerance loosened vs. the pure-f32 version because MXU operands are
    # bf16 (f32 accumulation); BN/ReLU math stays in f32.
    assert jnp.allclose(out, ref, atol=5e-2, rtol=5e-2), "mismatch vs reference"

    print("KERNEL_OK")
</pallas_src>

<mosaic_0001>
module attributes {stable_mosaic.version = 11 : i64} {
  func.func @_deep_net_kernel(%arg0: i32, %arg1: memref<16x128xf32, #tpu.memory_space<vmem>>, %arg2: memref<1x128x128xbf16, #tpu.memory_space<vmem>>, %arg3: memref<1x1x128xf32, #tpu.memory_space<vmem>>, %arg4: memref<1x1x128xf32, #tpu.memory_space<vmem>>, %arg5: memref<16x128xf32, #tpu.memory_space<vmem>>, %arg6: memref<16x128xf32, #tpu.memory_space<vmem>>) attributes {dimension_semantics = [#tpu.dimension_semantics<arbitrary>], iteration_bounds = array<i64: 2>, scalar_prefetch = 0 : i64, scratch_operands = 1 : i64, tpu.core_type = #tpu.core_type<tc>, window_params = [{pipeline_mode = #tpu.pipeline_mode<synchronous>, transform_indices = @transform_0, window_bounds = array<i64: 16, 128>}, {transform_indices = @transform_1, window_bounds = array<i64: 1, 128, 128>}, {transform_indices = @transform_2, window_bounds = array<i64: 1, 1, 128>}, {transform_indices = @transform_3, window_bounds = array<i64: 1, 1, 128>}, {pipeline_mode = #tpu.pipeline_mode<synchronous>, transform_indices = @transform_4, window_bounds = array<i64: 16, 128>}]} {
    %c0_i32 = arith.constant 0 : i32
    %0 = arith.cmpi eq, %arg0, %c0_i32 : i32
    %1 = arith.extui %0 : i1 to i32
    %c0_i32_0 = arith.constant 0 : i32
    %2 = arith.cmpi ne, %1, %c0_i32_0 : i32
    scf.if %2 {
      %c0_22 = arith.constant 0 : index
      %c0_23 = arith.constant 0 : index
      %48 = vector.load %arg1[%c0_22, %c0_23] : memref<16x128xf32, #tpu.memory_space<vmem>>, vector<16x128xf32>
      %c0_24 = arith.constant 0 : index
      %c0_25 = arith.constant 0 : index
      %49 = vector.load %arg6[%c0_24, %c0_25] : memref<16x128xf32, #tpu.memory_space<vmem>>, vector<16x128xf32>
      tpu.vector_store %arg6[%c0_24, %c0_25], %48 {strides = array<i32>} : memref<16x128xf32, #tpu.memory_space<vmem>>, vector<16x128xf32>,
    } else {
    }
    %c0 = arith.constant 0 : index
    %c0_1 = arith.constant 0 : index
    %3 = vector.load %arg6[%c0, %c0_1] : memref<16x128xf32, #tpu.memory_space<vmem>>, vector<16x128xf32>
    %4 = arith.truncf %3 : vector<16x128xf32> to vector<16x128xbf16>
    %c0_2 = arith.constant 0 : index
    %c0_3 = arith.constant 0 : index
    %c0_4 = arith.constant 0 : index
    %5 = vector.load %arg2[%c0_2, %c0_3, %c0_4] : memref<1x128x128xbf16, #tpu.memory_space<vmem>>, vector<1x128x128xbf16>
    %6 = vector.shape_cast %5 : vector<1x128x128xbf16> to vector<128x128xbf16>
    %cst = arith.constant dense<0.000000e+00> : vector<16x128xf32>
    %7 = tpu.matmul %4, %6, %cst {dimension_numbers = #tpu.dot_dimension_numbers<[1], [0], [0], [1], [0, 0, 1, 1], [], []>} : vector<16x128xbf16>, vector<128x128xbf16>, vector<16x128xf32> -> vector<16x128xf32>
    %cst_5 = arith.constant dense<0.000000e+00> : vector<128xf32>
    %8 = vector.multi_reduction <add>, %7, %cst_5 [0] : vector<16x128xf32> to vector<128xf32>
    %9 = vector.shape_cast %8 : vector<128xf32> to vector<1x128xf32>
    %cst_6 = arith.constant 1.250000e-01 : f32
    %10 = vector.broadcast %cst_6 : f32 to vector<1x128xf32>
    %11 = arith.mulf %9, %10 : vector<1x128xf32>
    %12 = arith.mulf %7, %7 : vector<16x128xf32>
    %cst_7 = arith.constant dense<0.000000e+00> : vector<128xf32>
    %13 = vector.multi_reduction <add>, %12, %cst_7 [0] : vector<16x128xf32> to vector<128xf32>
    %14 = vector.shape_cast %13 : vector<128xf32> to vector<1x128xf32>
    %cst_8 = arith.constant 1.250000e-01 : f32
    %15 = vector.broadcast %cst_8 : f32 to vector<1x128xf32>
    %16 = arith.mulf %14, %15 : vector<1x128xf32>
    %17 = arith.mulf %11, %11 : vector<1x128xf32>
    %18 = arith.subf %16, %17 : vector<1x128xf32>
    %cst_9 = arith.constant 0.000000e+00 : f32
    %19 = vector.broadcast %cst_9 : f32 to vector<1x128xf32>
    %20 = arith.maximumf %18, %19 : vector<1x128xf32>
    %c0_10 = arith.constant 0 : index
    %c0_11 = arith.constant 0 : index
    %c0_12 = arith.constant 0 : index
    %21 = vector.load %arg3[%c0_10, %c0_11, %c0_12] : memref<1x1x128xf32, #tpu.memory_space<vmem>>, vector<1x1x128xf32>
    %22 = vector.shape_cast %21 : vector<1x1x128xf32> to vector<1x128xf32>
    %cst_13 = arith.constant 9.99999974E-6 : f32
    %23 = vector.broadcast %cst_13 : f32 to vector<1x128xf32>
    %24 = arith.addf %20, %23 : vector<1x128xf32>
    %25 = math.rsqrt %24 : vector<1x128xf32>
    %26 = arith.mulf %22, %25 : vector<1x128xf32>
    %c0_14 = arith.constant 0 : index
    %c0_15 = arith.constant 0 : index
    %c0_16 = arith.constant 0 : index
    %27 = vector.load %arg4[%c0_14, %c0_15, %c0_16] : memref<1x1x128xf32, #tpu.memory_space<vmem>>, vector<1x1x128xf32>
    %28 = vector.shape_cast %27 : vector<1x1x128xf32> to vector<1x128xf32>
    %29 = arith.mulf %11, %26 : vector<1x128xf32>
    %30 = arith.subf %28, %29 : vector<1x128xf32>
    %31 = vector.broadcast %26 : vector<1x128xf32> to vector<16x128xf32>
    %32 = arith.mulf %7, %31 : vector<16x128xf32>
    %33 = vector.broadcast %30 : vector<1x128xf32> to vector<16x128xf32>
    %34 = arith.addf %32, %33 : vector<16x128xf32>
    %cst_17 = arith.constant 0.000000e+00 : f32
    %35 = vector.broadcast %cst_17 : f32 to vector<16x128xf32>
    %36 = arith.maximumf %34, %35 : vector<16x128xf32>
    %37 = tpu.iota {dimensions = array<i32: 0>} : vector<16x128xi32>
    %c8_i32 = arith.constant 8 : i32
    %38 = vector.broadcast %c8_i32 : i32 to vector<16x128xi32>
    %39 = arith.cmpi slt, %37, %38 : vector<16x128xi32>
    %cst_18 = arith.constant 0.000000e+00 : f32
    %40 = vector.broadcast %cst_18 : f32 to vector<16x128xf32>
    %41 = arith.select %39, %36, %40 : vector<16x128xi1>, vector<16x128xf32>
    %c1_i32 = arith.constant 1 : i32
    %42 = arith.cmpi slt, %arg0, %c1_i32 : i32
    %43 = arith.extui %42 : i1 to i32
    %c0_i32_19 = arith.constant 0 : i32
    %44 = arith.cmpi ne, %43, %c0_i32_19 : i32
    scf.if %44 {
      %c0_22 = arith.constant 0 : index
      %c0_23 = arith.constant 0 : index
      %48 = vector.load %arg6[%c0_22, %c0_23] : memref<16x128xf32, #tpu.memory_space<vmem>>, vector<16x128xf32>
      tpu.vector_store %arg6[%c0_22, %c0_23], %41 {strides = array<i32>} : memref<16x128xf32, #tpu.memory_space<vmem>>, vector<16x128xf32>,
    } else {
    }
    %c1_i32_20 = arith.constant 1 : i32
    %45 = arith.cmpi eq, %arg0, %c1_i32_20 : i32
    %46 = arith.extui %45 : i1 to i32
    %c0_i32_21 = arith.constant 0 : i32
    %47 = arith.cmpi ne, %46, %c0_i32_21 : i32
    scf.if %47 {
      %c0_22 = arith.constant 0 : index
      %c0_23 = arith.constant 0 : index
      %48 = vector.load %arg5[%c0_22, %c0_23] : memref<16x128xf32, #tpu.memory_space<vmem>>, vector<16x128xf32>
      tpu.vector_store %arg5[%c0_22, %c0_23], %41 {strides = array<i32>} : memref<16x128xf32, #tpu.memory_space<vmem>>, vector<16x128xf32>,
    } else {
    }
    return
  }
  func.func @transform_0(%arg0: i32) -> (i32, i32) {
    %c0_i32 = arith.constant 0 : i32
    %c0_i32_0 = arith.constant 0 : i32
    %c0_i32_1 = arith.constant 0 : i32
    return %c0_i32, %c0_i32_0 : i32, i32
  }
  func.func @transform_1(%arg0: i32) -> (i32, i32, i32) {
    %c0_i32 = arith.constant 0 : i32
    %c0_i32_0 = arith.constant 0 : i32
    %c0_i32_1 = arith.constant 0 : i32
    return %arg0, %c0_i32, %c0_i32_0 : i32, i32, i32
  }
  func.func @transform_2(%arg0: i32) -> (i32, i32, i32) {
    %c0_i32 = arith.constant 0 : i32
    %c0_i32_0 = arith.constant 0 : i32
    %c0_i32_1 = arith.constant 0 : i32
    return %arg0, %c0_i32, %c0_i32_0 : i32, i32, i32
  }
  func.func @transform_3(%arg0: i32) -> (i32, i32, i32) {
    %c0_i32 = arith.constant 0 : i32
    %c0_i32_0 = arith.constant 0 : i32
    %c0_i32_1 = arith.constant 0 : i32
    return %arg0, %c0_i32, %c0_i32_0 : i32, i32, i32
  }
  func.func @transform_4(%arg0: i32) -> (i32, i32) {
    %c0_i32 = arith.constant 0 : i32
    %c0_i32_0 = arith.constant 0 : i32
    %c0_i32_1 = arith.constant 0 : i32
    return %c0_i32, %c0_i32_0 : i32, i32
  }
}

</mosaic_0001>

<bundles_post_ra>
// kernel: _deep_net_call.1
= control target key start
LH: loop header
LB: loop body
LE: loop exit
PB: predicated region body
PF: predicated region fallthrough
CT: control target
= control target key end

     0   :  { %9 = vsyncpa [#allocation4], 0  ;;  %s765_s0 = inlined_call_operand.vmem [shape: f32[16,128], index: 0, kind: input, shape index: {}]   ;;  %s766_s1 = inlined_call_operand.hbm [shape: bf16[2,128,128], index: 1, kind: input, shape index: {}]   ;;  %s767_s2 = inlined_call_operand.vmem [shape: f32[2,1,128], index: 2, kind: input, shape index: {}]   ;;  %s768_s3 = inlined_call_operand.vmem [shape: f32[2,1,128], index: 3, kind: input, shape index: {}]   ;;  %s769_s4 = inlined_call_operand.vmem [shape: f32[16,128], index: 4, kind: output, shape index: {}]  }
   0x1   :  { %11 = vsyncpa [#allocation4 + $0x1], 0  ;;  %s641_s15 = smov 0   ;;  %s643_s16 = smov 0  }
   0x2   :  { %s645_s17 = smov 0   ;;  %s647_s18 = smov 0  }
   0x3 LB: > { %s660_s19 = sadd.s32 4294967295, %s610_s18   ;;  %s663_s20 = sadd.s32 1, %s610_s18   ;;  %s610_s18 = sphi %s647_s18, %s776_s18   ;;  %s606_s17 = sphi %s645_s17, %s775_s17   ;;  %s602_s16 = sphi %s643_s16, %s774_s16   ;;  %s598_s15 = sphi %s641_s15, %s773_s15  }
   0x4   : > { %s42_s21 = ssub.s32 %s610_s18, %s663_s20  ;;  %s45_s22 = sadd.s32 1, %s606_s17 }
   0x5   : > { %p43_p0 = scmp.eq.s32.totalorder %s42_s21, 0  ;;  %p52_p1 = scmp.ne.s32.totalorder %s606_s17, %s602_s16 }
   0x6   : > { %p53_p2 = scmp.eq.s32.totalorder %s610_s18, 0  ;;  %p58_p3 = scmp.ne.s32.totalorder %s602_s16, %s598_s15 }
   0x7   : > { %s673_s23 = scalar_select %p43_p0, %s606_s17, %s45_s22  }
   0x8   : > { %p675_p4 = por %p53_p2, %p52_p1  ;;  %p59_p5 = scmp.eq.s32.totalorder %s660_s19, 0 }
   0x9   : > { %p507_p6 = scmp.lt.s32.totalorder %s610_s18, 2  ;;  %s158_s26 = sand.u32 1, %s606_s17  }
   0xa   : > { %p681_p7 = por %p59_p5, %p58_p3  ;;  %s450_s27 = sshll.u32 %s158_s26, 6 }
   0xb   : > { %s492_s28 = sshll.u32 %s610_s18, 6  ;;  %s162_s6 = scalar_lea.vmem [#allocation3], %s450_s27 }
   0xc   : > { %s167_s5 = scalar_lea.hbm %s766_s1, %s492_s28  ;;  %s170_s7 = sshll.u32 %s162_s6, 4  ;;  %s171_s7 = int_to_ptr.vmem [resolvable:$true] %s170_s7 }
   0xd   : > { %s168_s8 = sshll.u32 %s167_s5, 4  ;;  %p692_p8 = pnand %p507_p6, %p675_p4  ;;  %s169_s8 = int_to_ptr.hbm [resolvable:$true] %s168_s8 }
   0xe   : > { %p453_p9 = scmp.ge.s32.totalorder %s610_s18, 1  ;;  %s159_s10 = scalar_lea.sflag [#allocation4], %s158_s26 }
   0xf   : > { %s546_s11 = sshra.s32 %s169_s8, 4  ;;  %p550_p11 = pneg %p692_p8  ;;  %s547_s11 = int_to_ptr.hbm [resolvable:$true] %s546_s11 }
  0x10   : > { %s548_s12 = scalar_lea.hbm %s547_s11, 64  ;;  %s553_s15 = scalar_lea.hbm %s766_s1, 128 }
  0x11   : > { %p549_p10 = scmp.ne.s32.totalorder %s547_s11, %s548_s12  ;;  %p554_p0 = scmp.lt.s32.totalorder %s547_s11, %s766_s1 }
  0x12   : > { %p555_p1 = scmp.lt.s32.totalorder %s553_s15, %s548_s12 }
  0x13   : > { %p551_p12 = pnand %p550_p11, %p549_p10 }
  0x14   : > { %p556_p2 = por %p555_p1, %p554_p0 }
  0x15   : > { %p552_p13 = pneg %p551_p12 }
  0x17   : > { %p557_p3 = pnand %p556_p2, %p552_p13 }
  0x19   : > { %560 = shalt.err (!%p557_p3)
}
  0x1a   : > { %s612_s24 = smov 64   ;;  %s613_s26 = smov 4  }
  0x1b   : > { %506 = dma.hbm_to_vmem [thread:$0]  (!%p692_p8), %s169_s8, 1024, %s171_s7, %s159_s10, %s612_s24, %s612_s24, %s613_s26  }
  0x1c   : > { %p190_p4 = scmp.lt.s32.totalorder %s610_s18, 3 }
  0x1e   : > { %p191_p5 = pnand %p453_p9, %p190_p4 }
  0x1f   : > { %s196_s27 = sand.u32 (!%p191_p5), 1, %s602_s16  }
  0x20   : > { %194 = sbr.rel (%p191_p5) target bundleno = 280 (0x118), region = 36  ;;  %s454_s28 = sshll.u32 (!%p191_p5), %s196_s27, 6 }
  0x21   : > { %s197_s29 = scalar_lea.sflag (!%p191_p5), [#allocation4], %s196_s27  ;;  %s200_s30 = scalar_lea.vmem (!%p191_p5), [#allocation3], %s454_s28 }
  0x25   : > { %593 = dma.done.wait (%p681_p7), %s197_s29, 1024  }
  0x26   : > { %595 = vsyncadd (%p681_p7), %s197_s29, 4294966272  ;;  %p227_p6 = scmp.lt.s32.totalorder %s660_s19, 1  ;;  %p455_p8 = scmp.ne.s32.totalorder %s660_s19, 0 }
  0x28   : > { %s717_s5 = scalar_select %p227_p6, %s660_s19, 1 }
  0x29   : > { %236 = sbr.rel (%p455_p8) target bundleno = 49 (0x31), region = 44 }
  0x2a   : > { %s229_s7 = scalar_lea.vmem %s767_s2, %s717_s5  ;;  %s232_s10 = scalar_lea.vmem %s768_s3, %s717_s5 }
  0x2e   : > { %v237_v0 = vld [vmem:[%s765_s0] sm:$0xff]  ;;  %v238_v1 = vld [vmem:[%s765_s0 + $0x8] sm:$0xff] }
  0x2f   : > { %239 = vst [vmem:[#allocation2] sm:$0xff] %v237_v0 }
  0x30   : > { %240 = vst [vmem:[#allocation2 + $0x8] sm:$0xff] %v238_v1 }
  0x31 PF: > { %v500_v2 = vld [vmem:[%s200_s30 + $0x38] sm:$0xff]  ;;  %v499_v3 = vld [vmem:[%s200_s30 + $0x30] sm:$0xff]  ;;  %v498_v4 = vld [vmem:[%s200_s30 + $0x28] sm:$0xff]  ;;  %p488_p7 = scmp.ge.s32.totalorder %s660_s19, 1 }
  0x32   : > { %308 = vmatpush.bf16.msra.mxu0 %v500_v2  ;;  %v497_v5 = vld [vmem:[%s200_s30 + $0x20] sm:$0xff]  ;;  %v496_v6 = vld [vmem:[%s200_s30 + $0x18] sm:$0xff]  ;;  %v495_v7 = vld [vmem:[%s200_s30 + $0x10] sm:$0xff] }
  0x33   : > { %v494_v8 = vld [vmem:[%s200_s30 + $0x8] sm:$0xff]  ;;  %v493_v9 = vld [vmem:[%s200_s30] sm:$0xff]  ;;  %v343_v42 = vld [vmem:[%s229_s7] sm:$0x1] }
  0x34   : > { %v356_v46 = vld [vmem:[%s232_s10] sm:$0x1] }
  0x36   : > { %309 = vmatpush.bf16.msra.mxu0 %v499_v3  ;;  %v241_v10 = vld [vmem:[#allocation2] sm:$0xff] }
  0x37   : > { %v242_v11 = vld [vmem:[#allocation2 + $0x8] sm:$0xff] }
  0x38   : > { %v243_v12 = vpack.c.bf16 %v242_v11, %v241_v10 }
  0x3a   : > { %310 = vmatpush.bf16.msra.mxu0 %v498_v4 }
  0x3e   : > { %311 = vmatpush.bf16.msra.mxu0 %v497_v5 }
  0x42   : > { %312 = vmatpush.bf16.msra.mxu0 %v496_v6 }
  0x46   : > { %313 = vmatpush.bf16.msra.mxu0 %v495_v7 }
  0x4a   : > { %314 = vmatpush.bf16.msra.mxu0 %v494_v8 }
  0x4e   : > { %315 = vmatpush.bf16.msra.mxu0 %v493_v9 }
  0x51   : > { %316 = vmatmul.bf16.vlgmr.msra.gmra.mxu0 %v243_v12 }
  0xce   : > { %v317_v13 = vpop.f32.mrf.mxu0 }
  0xcf   : > { %v330_v15 = vmul.f32 %v317_v13, %v317_v13 }
  0xd6   : > { %v319_v14 = vpop.f32.mrf.mxu0 }
  0xd7   : > { %v322_v16 = vadd.f32 %v319_v14, %v317_v13  ;;  %v331_v17 = vmul.f32 %v319_v14, %v319_v14 }
  0xd9   : > { %v323_v18 = vrot.slane %v322_v16, 4  ;;  %v332_v19 = vadd.f32 %v331_v17, %v330_v15 }
  0xdb   : > { %v324_v20 = vadd.f32 %v323_v18, %v322_v16  ;;  %v333_v21 = vrot.slane %v332_v19, 4 }
  0xdd   : > { %v325_v22 = vrot.slane %v324_v20, 2  ;;  %v334_v23 = vadd.f32 %v333_v21, %v332_v19 }
  0xdf   : > { %v326_v24 = vadd.f32 %v325_v22, %v324_v20  ;;  %v335_v25 = vrot.slane %v334_v23, 2 }
  0xe1   : > { %v327_v26 = vrot.slane %v326_v24, 1  ;;  %v336_v27 = vadd.f32 %v335_v25, %v334_v23 }
  0xe3   : > { %v328_v28 = vadd.f32 %v327_v26, %v326_v24  ;;  %v337_v29 = vrot.slane %v336_v27, 1 }
  0xe5   : > { %v329_v30 = vmul.f32 0.125, %v328_v28  ;;  %v338_v31 = vadd.f32 %v337_v29, %v336_v27 }
  0xe7   : > { %v339_v32 = vmul.f32 0.125, %v338_v31  ;;  %v340_v33 = vmul.f32 %v329_v30, %v329_v30 }
  0xe9   : > { %v341_v34 = vsub.f32 %v339_v32, %v340_v33 }
  0xeb   : > { %v342_v35 = vmax.f32 %v341_v34, 0.0 }
  0xed   : > { %v344_v36 = vadd.f32 1e-05, %v342_v35 }
  0xef   : > { %544 = vrsqrt.f32 %v344_v36  ;;  %vm351_vm1 = vweird.f32 %v344_v36 }
  0xf5   : > { %v545_v37 = vpop.eup %544 }
  0xf6   : > { %v346_v38 = vmul.f32 %v545_v37, %v344_v36  ;;  %vm352_vm0 = vweird.f32 %v545_v37 }
  0xf7   : > { %vm353_vm2 = vmor %vm351_vm1, %vm352_vm0 }
  0xf8   : > { %v347_v39 = vmul.f32 %v545_v37, %v346_v38 }
  0xfa   : > { %v348_v40 = vmul.f32 0.5, %v347_v39 }
  0xfc   : > { %v349_v41 = vsub.f32 1.5, %v348_v40 }
  0xfe   : > { %v350_v43 = vmul.f32 %v545_v37, %v349_v41 }
 0x100   : > { %v354_v44 = vsel %vm353_vm2, %v545_v37, %v350_v43 }
 0x101   : > { %v355_v45 = vmul.f32 %v354_v44, %v343_v42 }
 0x103   : > { %v357_v47 = vmul.f32 %v355_v45, %v329_v30  ;;  %v360_v48 = vperm.slane %v355_v45, 0 }
 0x105   : > { %v358_v49 = vsub.f32 %v356_v46, %v357_v47  ;;  %v362_v50 = vmul.f32 %v360_v48, %v317_v13 }
 0x107   : > { %v365_v51 = vperm.slane %v358_v49, 0  ;;  %381 = sbr.rel (%p488_p7) target bundleno = 271 (0x10f), region = 48 }
 0x109   : > { %v367_v52 = vadd.f32 %v365_v51, %v362_v50 }
 0x10b   : > { %v369_v53 = vmax.f32 %v367_v52, 0.0 }
 0x10c   : > { %v614_v54 = vmov 0.0  }
 0x10d   : > { %382 = vst [vmem:[#allocation2] sm:$0xff] %v369_v53 }
 0x10e   : > { %383 = vst [vmem:[#allocation2 + $0x8] sm:$0xff] %v614_v54 }
 0x10f PF: > { %p489_p9 = scmp.ne.s32.totalorder %s660_s19, 1 }
 0x111   : > { %387 = sbr.rel (%p489_p9) target bundleno = 280 (0x118), region = 52 }
 0x116   : > { %388 = vst [vmem:[%s769_s4] sm:$0xff] %v369_v53  ;;  %v615_v55 = vmov 0.0  }
 0x117   : > { %389 = vst [vmem:[%s769_s4 + $0x8] sm:$0xff] %v615_v55 }
 0x118 PF: > { %p14_p10 = scmp.ge.s32.totalorder %s663_s20, 4   ;;  %s773_s15 = smov %s602_s16 }
 0x119   : > { %s774_s16 = smov %s606_s17  ;;  %s775_s17 = smov %s673_s23 }
 0x11a   : > { %s776_s18 = smov %s663_s20  ;;  %16 = sbr.rel (!%p14_p10) target bundleno = 3 (0x3), region = 90 }
 0x11f   :  { %401 = vsyncpa [#allocation4], 1 }
 0x120   :  { %403 = vsyncpa [#allocation4 + $0x1], 1 }

</bundles_post_ra>
